<compile_context>
chip_gen: v7x
topology: tpu7x:2x2x1
jax: 0.10.0
libtpu: 0.0.40
codegen_flags: <defaults>
</compile_context>

<pallas_src>
import jax
import jax.numpy as jnp
from jax import lax
from jax.experimental import pallas as pl
from jax.experimental.pallas import tpu as pltpu

LANE = 128
SUBLANE = 8
ALIGN = SUBLANE * LANE           # 1024 elements -> kernel rows are a multiple of 8
CHUNK_ROWS = 512                 # rows per in-kernel sub-chunk (bounds f32 temps)
MAX_BLOCK_ROWS = 8192            # 8192 x 128 x 4 B = 4 MiB per f32 input block
NUM_SLICES = 2                   # shard the tile loop across up to 2 TensorCores (v7x)
VMEM_LIMIT_DEFAULT = 40 * 1024 * 1024


def _vmem_limit_bytes():
    # Raise the scoped-VMEM limit above the 16/32 MiB defaults so 8192-row tiles
    # double-buffer cleanly; cap below physical capacity (v7x has only 64 MiB).
    limit = VMEM_LIMIT_DEFAULT
    try:
        info = pltpu.get_tpu_info()
        cap = getattr(info, "vmem_capacity_bytes", None)
        if cap:
            limit = min(limit, int(cap) * 3 // 4)
    except Exception:
        pass
    return limit


def _choose_block_rows(rows, max_block_rows):
    mbr = min(max_block_rows, rows)
    if mbr >= CHUNK_ROWS:
        # Large case: tile is a multiple of CHUNK_ROWS and never exceeds `rows`.
        return (mbr // CHUNK_ROWS) * CHUNK_ROWS
    # Small case: one chunk per tile; rows is always a multiple of 8.
    return max(SUBLANE, (mbr // SUBLANE) * SUBLANE)


def _make_loss_kernel(*, block_rows, chunk_rows, acc_rows, rows_valid,
                      tiles_per_slice, full_tiles, total_tiles_scheduled):
    n_chunks = block_rows // chunk_rows
    folds = chunk_rows // acc_rows

    def kernel(pre_ref, tgt_ref, out_ref, acc_ref):
        p = pl.program_id(0)            # core-slice axis ("parallel")
        t = pl.program_id(1)            # tile axis within a slice ("arbitrary")
        g = p * tiles_per_slice + t     # global tile index (may exceed real tiles)

        @pl.when(t == 0)
        def _init():
            acc_ref[...] = jnp.zeros_like(acc_ref)

        def accumulate_chunk(c, masked):
            if isinstance(c, int):
                row0 = c * chunk_rows
            else:
                row0 = pl.multiple_of(c * chunk_rows, chunk_rows)
            pre = pre_ref[pl.ds(row0, chunk_rows), :].astype(jnp.float32)
            tgt = tgt_ref[pl.ds(row0, chunk_rows), :].astype(jnp.float32)
            if masked:
                # Rows past the end of the slab (partial last tile, or phantom
                # tiles scheduled past the real tile count) contribute exactly 0:
                # (1 - 1) * (1/1) == 0.  The mean divides by the true n outside.
                row_ids = (lax.broadcasted_iota(jnp.int32, (chunk_rows, LANE), 0)
                           + g * block_rows + row0)
                valid = row_ids < rows_valid
                pre = jnp.where(valid, pre, 1.0)
                tgt = jnp.where(valid, tgt, 1.0)
            # EUP reciprocal + VPU multiply instead of a multi-op VALU divide.
            rel = (pre - tgt) * pl.reciprocal(tgt, approx=False)
            if folds == 1:
                acc_ref[...] += rel
            else:
                acc_ref[...] += rel.reshape(folds, acc_rows, LANE).sum(axis=0)

        def accumulate_tile(masked):
            if n_chunks == 1:
                accumulate_chunk(0, masked)
            else:
                def body(c, carry):
                    accumulate_chunk(c, masked)
                    return carry
                lax.fori_loop(0, n_chunks, body, 0)

        if full_tiles >= total_tiles_scheduled:
            # Every scheduled tile is fully populated: no masking anywhere.
            accumulate_tile(False)
        elif full_tiles == 0:
            accumulate_tile(True)
        else:
            # Mask work (iota + compare + selects) only on partial/phantom tiles.
            @pl.when(g < full_tiles)
            def _full():
                accumulate_tile(False)

            @pl.when(g >= full_tiles)
            def _partial():
                accumulate_tile(True)

        @pl.when(t == pl.num_programs(1) - 1)
        def _finalize():
            out_ref[0, 0] = jnp.sum(acc_ref[...])

    return kernel


def _pallas_rel_sum(pre2, tgt2, rows, max_block_rows):
    block_rows = _choose_block_rows(rows, max_block_rows)
    chunk_rows = min(CHUNK_ROWS, block_rows)
    # Tall accumulator (64 rows when possible) -> 8 independent vreg add chains
    # instead of one, better VALU slot packing in the fold.
    acc_rows = 64 if block_rows % 64 == 0 else SUBLANE
    assert block_rows % chunk_rows == 0 and chunk_rows % acc_rows == 0

    num_tiles = pl.cdiv(rows, block_rows)
    num_slices = NUM_SLICES if num_tiles >= NUM_SLICES else 1
    tiles_per_slice = pl.cdiv(num_tiles, num_slices)
    total_scheduled = num_slices * tiles_per_slice
    full_tiles = rows // block_rows
    last_tile = num_tiles - 1

    kernel = _make_loss_kernel(
        block_rows=block_rows, chunk_rows=chunk_rows, acc_rows=acc_rows,
        rows_valid=rows, tiles_per_slice=tiles_per_slice,
        full_tiles=full_tiles, total_tiles_scheduled=total_scheduled)

    def in_index_map(p, t):
        # Clamp phantom tiles (when num_tiles does not split evenly across the
        # slices) onto the last real tile; their rows are fully masked in-kernel.
        return (jnp.minimum(p * tiles_per_slice + t, last_tile), 0)

    partials = pl.pallas_call(
        kernel,
        out_shape=jax.ShapeDtypeStruct((num_slices, 1), jnp.float32),
        grid_spec=pltpu.PrefetchScalarGridSpec(
            num_scalar_prefetch=0,
            grid=(num_slices, tiles_per_slice),
            in_specs=[
                # NOTE: default double buffering; pl.Buffered(3) is a possible
                # few-percent sweep if a trace shows exposed DMA between steps.
                pl.BlockSpec((block_rows, LANE), in_index_map),
                pl.BlockSpec((block_rows, LANE), in_index_map),
            ],
            out_specs=pl.BlockSpec((1, 1), lambda p, t: (p, 0),
                                   memory_space=pltpu.SMEM),
            scratch_shapes=[pltpu.VMEM((acc_rows, LANE), jnp.float32)],
        ),
        compiler_params=pltpu.CompilerParams(
            # Slice axis shards across TensorCores on v7x; tile axis accumulates.
            dimension_semantics=("parallel", "arbitrary"),
            vmem_limit_bytes=_vmem_limit_bytes(),
        ),
    )(pre2, tgt2)

    return jnp.sum(partials)


def my_loss(y_pre, y_target, *, max_block_rows=MAX_BLOCK_ROWS):
    """JAX/Pallas equivalent of torch.mean((y_pre - y_target) / y_target)."""
    assert y_pre.shape == y_target.shape
    n = y_pre.size

    pre = y_pre.reshape(-1)
    tgt = y_target.reshape(-1)
    # Keep native floating dtypes (e.g. bf16) to halve HBM traffic; the upcast
    # happens inside the kernel. Non-float inputs are promoted here.
    if not jnp.issubdtype(pre.dtype, jnp.floating):
        pre = pre.astype(jnp.float32)
    if not jnp.issubdtype(tgt.dtype, jnp.floating):
        tgt = tgt.astype(jnp.float32)

    # No jnp.pad: kernel consumes the (8*128)-aligned prefix; the <1024-element
    # tail is reduced in plain jnp and folded into the same sum.
    n_main = (n // ALIGN) * ALIGN
    rows = n_main // LANE

    total = jnp.zeros((), jnp.float32)
    if rows > 0:
        pre_main = pre if n_main == n else pre[:n_main]
        tgt_main = tgt if n_main == n else tgt[:n_main]
        total = total + _pallas_rel_sum(
            pre_main.reshape(rows, LANE), tgt_main.reshape(rows, LANE),
            rows, max_block_rows)
    if n_main < n:
        tp = pre[n_main:].astype(jnp.float32)
        tt = tgt[n_main:].astype(jnp.float32)
        total = total + jnp.sum((tp - tt) / tt)

    return total / jnp.float32(n)


if __name__ == "__main__":
    key = jax.random.PRNGKey(0)
    ks = jax.random.split(key, 6)

    def check(a, b, **kw):
        out = jax.block_until_ready(my_loss(a, b, **kw))
        ref = jnp.mean((a - b) / b)
        assert jnp.allclose(out, ref, atol=1e-5, rtol=1e-5), (out, ref, kw)

    # 1) Small NCHW-like example (module's intended usage); single aligned tile.
    shape = (2, 4, 16, 16)
    a = jax.random.normal(ks[0], shape, dtype=jnp.float32)
    # Keep the target away from zero for a sane relative-error loss.
    b = jax.random.uniform(ks[1], shape, dtype=jnp.float32, minval=0.5, maxval=1.5)
    check(a, b)

    # 2) Non-128-aligned size with forced small tiles: exercises the jnp tail
    #    path, the two-slice grid and the masked partial tile.
    shape2 = (3, 7, 41, 33)  # 28413 elements
    a2 = jax.random.normal(ks[2], shape2, dtype=jnp.float32)
    b2 = jax.random.uniform(ks[3], shape2, dtype=jnp.float32, minval=0.5, maxval=1.5)
    check(a2, b2, max_block_rows=64)

    # 3) Odd tile count: exercises the clamped "phantom" tile on slice 1.
    check(a2, b2, max_block_rows=48)

    # 4) Larger aligned case with default tiles: exercises the in-kernel chunk
    #    loop (block_rows > CHUNK_ROWS) and the masked last tile.
    shape3 = (2, 3, 160, 160)  # 153600 elements -> 1200 rows of 128 lanes
    a3 = jax.random.normal(ks[4], shape3, dtype=jnp.float32)
    b3 = jax.random.uniform(ks[5], shape3, dtype=jnp.float32, minval=0.5, maxval=1.5)
    check(a3, b3)

    print("KERNEL_OK")
</pallas_src>

<mosaic_0001>
module attributes {stable_mosaic.version = 11 : i64} {
  func.func @kernel(%arg0: i32, %arg1: i32, %arg2: memref<16x128xf32, #tpu.memory_space<vmem>>, %arg3: memref<16x128xf32, #tpu.memory_space<vmem>>, %arg4: memref<1x1xf32, #tpu.memory_space<smem>>, %arg5: memref<8x128xf32, #tpu.memory_space<vmem>>) attributes {dimension_semantics = [#tpu.dimension_semantics<parallel>, #tpu.dimension_semantics<arbitrary>], iteration_bounds = array<i64: 1, 1>, scalar_prefetch = 0 : i64, scratch_operands = 1 : i64, tpu.core_type = #tpu.core_type<tc>, window_params = [{transform_indices = @transform_0, window_bounds = array<i64: 16, 128>}, {transform_indices = @transform_1, window_bounds = array<i64: 16, 128>}, {transform_indices = @transform_2, window_bounds = array<i64: 1, 1>}]} {
    %c0_i32 = arith.constant 0 : i32
    %0 = arith.cmpi eq, %arg1, %c0_i32 : i32
    %1 = arith.extui %0 : i1 to i32
    %c0_i32_0 = arith.constant 0 : i32
    %2 = arith.cmpi ne, %1, %c0_i32_0 : i32
    scf.if %2 {
      %cst_10 = arith.constant 0.000000e+00 : f32
      %16 = vector.broadcast %cst_10 : f32 to vector<8x128xf32>
      %c0_11 = arith.constant 0 : index
      %c0_12 = arith.constant 0 : index
      %17 = vector.load %arg5[%c0_11, %c0_12] : memref<8x128xf32, #tpu.memory_space<vmem>>, vector<8x128xf32>
      tpu.vector_store %arg5[%c0_11, %c0_12], %16 {strides = array<i32>} : memref<8x128xf32, #tpu.memory_space<vmem>>, vector<8x128xf32>,
    } else {
    }
    %c0 = arith.constant 0 : index
    %c0_1 = arith.constant 0 : index
    %3 = vector.load %arg2[%c0, %c0_1] : memref<16x128xf32, #tpu.memory_space<vmem>>, vector<16x128xf32>
    %c0_2 = arith.constant 0 : index
    %c0_3 = arith.constant 0 : index
    %4 = vector.load %arg3[%c0_2, %c0_3] : memref<16x128xf32, #tpu.memory_space<vmem>>, vector<16x128xf32>
    %5 = arith.subf %3, %4 : vector<16x128xf32>
    %6 = tpu.reciprocal %4 : vector<16x128xf32> -> vector<16x128xf32>
    %7 = arith.mulf %5, %6 : vector<16x128xf32>
    %c0_4 = arith.constant 0 : index
    %c0_5 = arith.constant 0 : index
    %8 = vector.load %arg5[%c0_4, %c0_5] : memref<8x128xf32, #tpu.memory_space<vmem>>, vector<8x128xf32>
    %9 = vector.shape_cast %7 : vector<16x128xf32> to vector<2x8x128xf32>
    %cst = arith.constant dense<0.000000e+00> : vector<8x128xf32>
    %10 = vector.multi_reduction <add>, %9, %cst [0] : vector<2x8x128xf32> to vector<8x128xf32>
    %11 = arith.addf %8, %10 : vector<8x128xf32>
    %c0_6 = arith.constant 0 : index
    %c0_7 = arith.constant 0 : index
    %12 = vector.load %arg5[%c0_6, %c0_7] : memref<8x128xf32, #tpu.memory_space<vmem>>, vector<8x128xf32>
    tpu.vector_store %arg5[%c0_6, %c0_7], %11 {strides = array<i32>} : memref<8x128xf32, #tpu.memory_space<vmem>>, vector<8x128xf32>,
    %c0_i32_8 = arith.constant 0 : i32
    %13 = arith.cmpi eq, %arg1, %c0_i32_8 : i32
    %14 = arith.extui %13 : i1 to i32
    %c0_i32_9 = arith.constant 0 : i32
    %15 = arith.cmpi ne, %14, %c0_i32_9 : i32
    scf.if %15 {
      %c0_10 = arith.constant 0 : index
      %c0_11 = arith.constant 0 : index
      %16 = vector.load %arg5[%c0_10, %c0_11] : memref<8x128xf32, #tpu.memory_space<vmem>>, vector<8x128xf32>
      %17 = vector.shape_cast %16 : vector<8x128xf32> to vector<1x8x128xf32>
      %cst_12 = arith.constant dense<0.000000e+00> : vector<1xf32>
      %18 = vector.multi_reduction <add>, %17, %cst_12 [1, 2] : vector<1x8x128xf32> to vector<1xf32>
      %19 = vector.shape_cast %18 : vector<1xf32> to vector<1x1x1xf32>
      %20 = vector.extract %19[0, 0, 0] : f32 from vector<1x1x1xf32>
      %c0_13 = arith.constant 0 : index
      %c0_14 = arith.constant 0 : index
      %21 = memref.load %arg4[%c0_13, %c0_14] : memref<1x1xf32, #tpu.memory_space<smem>>
      memref.store %20, %arg4[%c0_13, %c0_14] : memref<1x1xf32, #tpu.memory_space<smem>>
    } else {
    }
    return
  }
  func.func @transform_0(%arg0: i32, %arg1: i32) -> (i32, i32) {
    %c1_i32 = arith.constant 1 : i32
    %0 = arith.muli %arg0, %c1_i32 : i32
    %1 = arith.addi %0, %arg1 : i32
    %c0_i32 = arith.constant 0 : i32
    %2 = arith.minsi %1, %c0_i32 : i32
    %c0_i32_0 = arith.constant 0 : i32
    %c0_i32_1 = arith.constant 0 : i32
    return %2, %c0_i32_0 : i32, i32
  }
  func.func @transform_1(%arg0: i32, %arg1: i32) -> (i32, i32) {
    %c1_i32 = arith.constant 1 : i32
    %0 = arith.muli %arg0, %c1_i32 : i32
    %1 = arith.addi %0, %arg1 : i32
    %c0_i32 = arith.constant 0 : i32
    %2 = arith.minsi %1, %c0_i32 : i32
    %c0_i32_0 = arith.constant 0 : i32
    %c0_i32_1 = arith.constant 0 : i32
    return %2, %c0_i32_0 : i32, i32
  }
  func.func @transform_2(%arg0: i32, %arg1: i32) -> (i32, i32) {
    %c0_i32 = arith.constant 0 : i32
    %c0_i32_0 = arith.constant 0 : i32
    return %arg0, %c0_i32 : i32, i32
  }
}

</mosaic_0001>

<bundles_post_ra>
// kernel: tpu_custom_call.1
= control target key start
LH: loop header
LB: loop body
LE: loop exit
PB: predicated region body
PF: predicated region fallthrough
CT: control target
= control target key end

     0   :  { %7 = vsyncpa [#allocation4], 0  ;;  %s240_s0 = inlined_call_operand.hbm [shape: f32[16,128], index: 0, kind: input, shape index: {}]   ;;  %s241_s1 = inlined_call_operand.hbm [shape: f32[16,128], index: 1, kind: input, shape index: {}]   ;;  %s242_s2 = inlined_call_operand.hbm [shape: f32[1,1], index: 2, kind: output, shape index: {}]  }
   0x1   :  { %8 = vsyncpa [#allocation7], 0 }
   0x2   :  { %9 = vsyncpa [#allocation5], 0  ;;  %s184_s9 = smov [#allocation3]   ;;  %s124_s13 = scalar_lea.hbm %s240_s0, 256 }
   0x3   :  { %s21_s10 = sshll.u32 %s184_s9, 4  ;;  %p125_p0 = scmp.ne.s32.totalorder %s240_s0, %s124_s13  ;;  %s22_s10 = int_to_ptr.vmem [resolvable:$true] %s21_s10 }
   0x4   :  { %p128_p1 = scmp.lt.u32.totalorder %s124_s13, %s240_s0 }
   0x6   :  { %p130_p2 = pnand %p128_p1, %p125_p0 }
   0x8   :  { %133 = shalt.err (!%p130_p2)
}
   0x9   :  { %s134_s18 = scalar_lea.vmem %s22_s10, 256  ;;  %p139_p4 = scmp.lt.s32.totalorder %s22_s10, %s22_s10 }
   0xa   :  { %p135_p3 = scmp.ne.s32.totalorder %s22_s10, %s134_s18  ;;  %p140_p5 = scmp.lt.s32.totalorder %s134_s18, %s134_s18 }
   0xc   :  { %p141_p6 = por %p140_p5, %p139_p4 }
   0xe   :  { %p142_p7 = pnand %p141_p6, %p135_p3 }
  0x10   :  { %145 = shalt.err (!%p142_p7)
}
  0x11   :  { %s185_s19 = smov 128   ;;  %s186_s20 = smov 8  }
  0x12   :  { %27 = dma.hbm_to_vmem [thread:$0]  %s240_s0, 256, %s22_s10, [#allocation4], %s185_s19, %s185_s19, %s186_s20  }
  0x13   :  { %s187_s23 = smov [#allocation6]   ;;  %s146_s27 = scalar_lea.hbm %s241_s1, 256 }
  0x14   :  { %s39_s24 = sshll.u32 %s187_s23, 4  ;;  %p147_p8 = scmp.ne.s32.totalorder %s241_s1, %s146_s27  ;;  %s40_s24 = int_to_ptr.vmem [resolvable:$true] %s39_s24 }
  0x15   :  { %p150_p9 = scmp.lt.u32.totalorder %s146_s27, %s241_s1 }
  0x17   :  { %p152_p10 = pnand %p150_p9, %p147_p8 }
  0x19   :  { %155 = shalt.err (!%p152_p10)
}
  0x1a   :  { %s156_s4 = scalar_lea.vmem %s40_s24, 256  ;;  %p161_p12 = scmp.lt.s32.totalorder %s40_s24, %s40_s24 }
  0x1b   :  { %p157_p11 = scmp.ne.s32.totalorder %s40_s24, %s156_s4  ;;  %p162_p13 = scmp.lt.s32.totalorder %s156_s4, %s156_s4 }
  0x1d   :  { %p163_p0 = por %p162_p13, %p161_p12 }
  0x1f   :  { %p164_p1 = pnand %p163_p0, %p157_p11 }
  0x21   :  { %167 = shalt.err (!%p164_p1)
}
  0x22   :  { %45 = dma.hbm_to_vmem [thread:$0]  %s241_s1, 256, %s40_s24, [#allocation7], %s185_s19, %s185_s19, %s186_s20  }
  0x23   :  { %178 = dma.done.wait [#allocation4], 256  }
  0x24   :  { %179 = vsyncadd [#allocation4], 4294967040 }
  0x25   :  { %180 = dma.done.wait [#allocation7], 256  }
  0x26   :  { %181 = vsyncadd [#allocation7], 4294967040  ;;  %v67_v0 = vld [vmem:[#allocation6] sm:$0xff]  ;;  %v68_v1 = vld [vmem:[#allocation6 + $0x8] sm:$0xff]  ;;  %s168_s8 = scalar_lea.hbm %s242_s2, 16 }
  0x27   :  { %120 = vrcp.f32 %v67_v0  ;;  %v65_v2 = vld [vmem:[#allocation3] sm:$0xff]  ;;  %v66_v3 = vld [vmem:[#allocation3 + $0x8] sm:$0xff]  ;;  %p169_p2 = scmp.ne.s32.totalorder %s242_s2, %s168_s8  ;;  %p172_p3 = scmp.lt.u32.totalorder %s168_s8, %s242_s2 }
  0x28   :  { %122 = vrcp.f32 %v68_v1  ;;  %v69_v4 = vsub.f32 %v65_v2, %v67_v0  ;;  %v70_v5 = vsub.f32 %v66_v3, %v68_v1 }
  0x29   :  { %p174_p4 = pnand %p172_p3, %p169_p2 }
  0x31   :  { %v121_v6 = vpop.eup %120 }
  0x32   :  { %v123_v7 = vpop.eup %122  ;;  %v73_v8 = vmul.f32 %v121_v6, %v69_v4 }
  0x33   :  { %v74_v9 = vmul.f32 %v123_v7, %v70_v5 }
  0x35   :  { %v76_v10 = vadd.f32 %v74_v9, %v73_v8 }
  0x37   :  { %83 = vadd.xlane.f32.xlu0 %v76_v10 }
  0xc4   :  { %v84_v11 = vpop.xlane.xlu0 %83 }
  0xc5   :  { %v85_v12 = vrot.slane %v84_v11, 4 }
  0xc7   :  { %v86_v13 = vadd.f32 %v85_v12, %v84_v11 }
  0xc9   :  { %v87_v14 = vrot.slane %v86_v13, 2 }
  0xcb   :  { %v88_v15 = vadd.f32 %v87_v14, %v86_v13 }
  0xcd   :  { %v89_v16 = vrot.slane %v88_v15, 1 }
  0xcf   :  { %v90_v17 = vadd.f32 %v89_v16, %v88_v15 }
  0xd1   :  { %113 = vpush %v90_v17 }
 0x102   :  { %s114_s1 = spop %113 }
 0x103   :  { %93 = sst [smem:[#allocation8]] %s114_s1 }
 0x104   :  { %177 = shalt.err (!%p174_p4)
}
 0x105   :  { %s188_s13 = smov [#allocation8]  }
 0x106   :  { %101 = dma.smem_to_hbm %s188_s13, 16, %s242_s2, [#allocation5]  }
 0x107   :  { %182 = dma.done.wait [#allocation5], 16  }
 0x108   :  { %183 = vsyncadd [#allocation5], 4294967280 }
 0x109   :  { %105 = sfence }
 0x10a   :  { %106 = vsyncpa [#allocation4], 1 }
 0x10b   :  { %107 = vsyncpa [#allocation7], 1 }
 0x10c   :  { %108 = vsyncpa [#allocation5], 1 }

</bundles_post_ra>
